<compile_context>
chip_gen: v6e
topology: v6e:2x2x1
jax: 0.10.0
libtpu: 0.0.40
codegen_flags: <defaults>
</compile_context>

<pallas_src>
import jax
import jax.numpy as jnp
from jax.experimental import pallas as pl
from jax.experimental.pallas import tpu as pltpu


BN_EPS = 1e-5
LANE = 128
SUBLANE_BF16 = 16   # bf16 packs 16 rows per vreg sublane group


def _round_up(n, m):
    return ((n + m - 1) // m) * m


def _disc_kernel(x_ref, w1_ref, b1_ref, w2_ref, b2_ref, w3_ref, b3_ref, o_ref):
    """One (TM, Dp) batch tile of the full forward pass, all resident in VMEM."""
    x = x_ref[...]                                                  # (TM, Dp) bf16

    # block 1: Linear(Dp, 512) [BN folded in] + LeakyReLU(0.2) (+ Dropout == id)
    h = jnp.dot(x, w1_ref[...], preferred_element_type=jnp.float32) + b1_ref[...]
    h = jnp.where(h > 0, h, 0.2 * h)

    # block 2: Linear(512, 128) [BN folded in] + LeakyReLU(0.2) (+ Dropout == id)
    h = jnp.dot(h.astype(jnp.bfloat16), w2_ref[...],
                preferred_element_type=jnp.float32) + b2_ref[...]
    h = jnp.where(h > 0, h, 0.2 * h)

    # head: Linear(128, 1) + Sigmoid — VPU mul + lane reduce, skip N=1 matmul
    logits = jnp.sum(h * w3_ref[...], axis=-1, keepdims=True) + b3_ref[...]
    o_ref[...] = jax.nn.sigmoid(logits)


def discriminator_forward(x, kparams, *, tm=256):
    """x: (B, D) f32 activations (flat image ++ label embedding)."""
    B, D = x.shape
    Dp = kparams["w1"].shape[0]

    # Batch tile: large enough to fill the MXU / amortize per-step overhead,
    # but never larger than the (sublane-padded) batch itself.
    tm = min(tm, _round_up(B, SUBLANE_BF16))
    Bp = _round_up(B, tm)

    # Zero-pad batch rows and feature lanes; cast the MXU input to bf16.
    xp = jnp.zeros((Bp, Dp), jnp.bfloat16)
    xp = xp.at[:B, :D].set(x.astype(jnp.bfloat16))

    const = lambda i: (0, 0)
    out = pl.pallas_call(
        _disc_kernel,
        out_shape=jax.ShapeDtypeStruct((Bp, 1), jnp.float32),
        grid=(Bp // tm,),
        in_specs=[
            pl.BlockSpec((tm, Dp), lambda i: (i, 0)),   # x tile (pipelined)
            pl.BlockSpec((Dp, 512), const),             # w1 (resident)
            pl.BlockSpec((1, 512), const),              # b1
            pl.BlockSpec((512, 128), const),            # w2 (resident)
            pl.BlockSpec((1, 128), const),              # b2
            pl.BlockSpec((1, 128), const),              # w3 row
            pl.BlockSpec((1, 1), const),                # b3
        ],
        out_specs=pl.BlockSpec((tm, 1), lambda i: (i, 0)),
        compiler_params=pltpu.CompilerParams(
            dimension_semantics=("parallel",),
            vmem_limit_bytes=16 << 20,
        ),
    )(xp, kparams["w1"], kparams["b1"], kparams["w2"], kparams["b2"],
      kparams["w3"], kparams["b3"])
    return out[:B]


def init_params(key, in_features, label_size, label_emb_size):
    """Raw (unfolded) parameters mimicking PyTorch defaults."""
    keys = jax.random.split(key, 7)

    def linear(kw, kb, fan_in, fan_out):
        bound = 1.0 / jnp.sqrt(fan_in)
        w = jax.random.uniform(kw, (fan_in, fan_out), jnp.float32, -bound, bound)
        b = jax.random.uniform(kb, (1, fan_out), jnp.float32, -bound, bound)
        return w, b

    w1, b1 = linear(keys[0], keys[1], in_features, 512)
    w2, b2 = linear(keys[2], keys[3], 512, 128)
    w3, b3 = linear(keys[4], keys[5], 128, 1)
    emb = jax.random.normal(keys[6], (label_size, label_emb_size), jnp.float32)

    return {
        "emb": emb,
        "w1": w1, "b1": b1,
        "g1": jnp.ones((1, 512), jnp.float32), "be1": jnp.zeros((1, 512), jnp.float32),
        "m1": jnp.zeros((1, 512), jnp.float32), "v1": jnp.ones((1, 512), jnp.float32),
        "w2": w2, "b2": b2,
        "g2": jnp.ones((1, 128), jnp.float32), "be2": jnp.zeros((1, 128), jnp.float32),
        "m2": jnp.zeros((1, 128), jnp.float32), "v2": jnp.ones((1, 128), jnp.float32),
        "w3": w3, "b3": b3,
    }


def fold_params(params, in_features):
    """Fold eval-mode BN into the linears, pad the contraction dim, cast to bf16."""
    Dp = _round_up(in_features, LANE)

    def fold(w, b, g, be, m, v):
        scale = g * jax.lax.rsqrt(v + BN_EPS)          # (1, out)
        return w * scale, (b - m) * scale + be

    w1, b1 = fold(params["w1"], params["b1"], params["g1"], params["be1"],
                  params["m1"], params["v1"])
    w2, b2 = fold(params["w2"], params["b2"], params["g2"], params["be2"],
                  params["m2"], params["v2"])

    w1p = jnp.zeros((Dp, w1.shape[1]), jnp.bfloat16)
    w1p = w1p.at[: w1.shape[0]].set(w1.astype(jnp.bfloat16))

    return {
        "w1": w1p,                                      # (Dp, 512) bf16
        "b1": b1.astype(jnp.float32),                   # (1, 512)
        "w2": w2.astype(jnp.bfloat16),                  # (512, 128) bf16
        "b2": b2.astype(jnp.float32),                   # (1, 128)
        "w3": params["w3"].T.astype(jnp.float32),       # (1, 128) for VPU mul
        "b3": params["b3"].astype(jnp.float32),         # (1, 1)
    }


def discriminator_apply(images, labels, params, kparams):
    """Glue in plain JAX: flatten NCHW image, gather label embedding, concat."""
    B = images.shape[0]
    flat = images.reshape(B, -1).astype(jnp.float32)           # (B, C*H*W)
    label_emb = jnp.take(params["emb"], labels, axis=0)        # (B, E)
    x = jnp.concatenate([flat, label_emb], axis=-1)            # (B, D)
    return discriminator_forward(x, kparams)


def _reference(images, labels, params):
    """Pure-JAX f32 reference of the unfolded module (eval mode)."""
    B = images.shape[0]
    x = jnp.concatenate(
        [images.reshape(B, -1), jnp.take(params["emb"], labels, axis=0)], axis=-1)

    def bn_lrelu(h, g, be, m, v):
        h = (h - m) * jax.lax.rsqrt(v + BN_EPS) * g + be
        return jnp.where(h > 0, h, 0.2 * h)

    h = bn_lrelu(x @ params["w1"] + params["b1"],
                 params["g1"], params["be1"], params["m1"], params["v1"])
    h = bn_lrelu(h @ params["w2"] + params["b2"],
                 params["g2"], params["be2"], params["m2"], params["v2"])
    return jax.nn.sigmoid(h @ params["w3"] + params["b3"])


if __name__ == "__main__":
    # Small shapes consistent with the module: image_shape = (1, 16, 16),
    # label_emb_size = 32, label_size = 10, batch = 2.
    C, H, W = 1, 16, 16
    LABEL_EMB = 32
    LABEL_SIZE = 10
    B = 2
    D = C * H * W + LABEL_EMB

    key = jax.random.PRNGKey(0)
    k_img, k_lab, k_par = jax.random.split(key, 3)

    images = jax.random.normal(k_img, (B, C, H, W), jnp.float32)
    labels = jax.random.randint(k_lab, (B,), 0, LABEL_SIZE, jnp.int32)
    params = init_params(k_par, D, LABEL_SIZE, LABEL_EMB)
    kparams = fold_params(params, D)

    out = discriminator_apply(images, labels, params, kparams)
    out = jax.block_until_ready(out)

    ref = _reference(images, labels, params)
    assert out.shape == (B, 1)
    # bf16 MXU inputs with f32 accumulation vs. an all-f32 reference:
    # relaxed tolerance per review note.
    assert jnp.allclose(out, ref, atol=2e-2, rtol=0.0), \
        float(jnp.max(jnp.abs(out - ref)))

    print("KERNEL_OK")
</pallas_src>

<mosaic_0001>
module attributes {stable_mosaic.version = 11 : i64} {
  func.func @_disc_kernel(%arg0: i32, %arg1: memref<16x384xbf16, #tpu.memory_space<vmem>>, %arg2: memref<384x512xbf16, #tpu.memory_space<vmem>>, %arg3: memref<1x512xf32, #tpu.memory_space<vmem>>, %arg4: memref<512x128xbf16, #tpu.memory_space<vmem>>, %arg5: memref<1x128xf32, #tpu.memory_space<vmem>>, %arg6: memref<1x128xf32, #tpu.memory_space<vmem>>, %arg7: memref<1x1xf32, #tpu.memory_space<vmem>>, %arg8: memref<16x1xf32, #tpu.memory_space<vmem>>) attributes {dimension_semantics = [#tpu.dimension_semantics<parallel>], iteration_bounds = array<i64: 1>, scalar_prefetch = 0 : i64, scratch_operands = 0 : i64, tpu.core_type = #tpu.core_type<tc>, window_params = [{transform_indices = @transform_0, window_bounds = array<i64: 16, 384>}, {pipeline_mode = #tpu.pipeline_mode<synchronous>, transform_indices = @transform_1, window_bounds = array<i64: 384, 512>}, {pipeline_mode = #tpu.pipeline_mode<synchronous>, transform_indices = @transform_2, window_bounds = array<i64: 1, 512>}, {pipeline_mode = #tpu.pipeline_mode<synchronous>, transform_indices = @transform_3, window_bounds = array<i64: 512, 128>}, {pipeline_mode = #tpu.pipeline_mode<synchronous>, transform_indices = @transform_4, window_bounds = array<i64: 1, 128>}, {pipeline_mode = #tpu.pipeline_mode<synchronous>, transform_indices = @transform_5, window_bounds = array<i64: 1, 128>}, {pipeline_mode = #tpu.pipeline_mode<synchronous>, transform_indices = @transform_6, window_bounds = array<i64: 1, 1>}, {transform_indices = @transform_7, window_bounds = array<i64: 16, 1>}]} {
    %c0 = arith.constant 0 : index
    %c0_0 = arith.constant 0 : index
    %0 = vector.load %arg1[%c0, %c0_0] : memref<16x384xbf16, #tpu.memory_space<vmem>>, vector<16x384xbf16>
    %c0_1 = arith.constant 0 : index
    %c0_2 = arith.constant 0 : index
    %1 = vector.load %arg2[%c0_1, %c0_2] : memref<384x512xbf16, #tpu.memory_space<vmem>>, vector<384x512xbf16>
    %cst = arith.constant dense<0.000000e+00> : vector<16x512xf32>
    %2 = tpu.matmul %0, %1, %cst {dimension_numbers = #tpu.dot_dimension_numbers<[1], [0], [0], [1], [0, 0, 1, 1], [], []>} : vector<16x384xbf16>, vector<384x512xbf16>, vector<16x512xf32> -> vector<16x512xf32>
    %c0_3 = arith.constant 0 : index
    %c0_4 = arith.constant 0 : index
    %3 = vector.load %arg3[%c0_3, %c0_4] : memref<1x512xf32, #tpu.memory_space<vmem>>, vector<1x512xf32>
    %4 = vector.broadcast %3 : vector<1x512xf32> to vector<16x512xf32>
    %5 = arith.addf %2, %4 : vector<16x512xf32>
    %cst_5 = arith.constant 0.000000e+00 : f32
    %6 = vector.broadcast %cst_5 : f32 to vector<16x512xf32>
    %7 = arith.cmpf ogt, %5, %6 : vector<16x512xf32>
    %cst_6 = arith.constant 2.000000e-01 : f32
    %8 = vector.broadcast %cst_6 : f32 to vector<16x512xf32>
    %9 = arith.mulf %8, %5 : vector<16x512xf32>
    %10 = arith.select %7, %5, %9 : vector<16x512xi1>, vector<16x512xf32>
    %11 = arith.truncf %10 : vector<16x512xf32> to vector<16x512xbf16>
    %c0_7 = arith.constant 0 : index
    %c0_8 = arith.constant 0 : index
    %12 = vector.load %arg4[%c0_7, %c0_8] : memref<512x128xbf16, #tpu.memory_space<vmem>>, vector<512x128xbf16>
    %cst_9 = arith.constant dense<0.000000e+00> : vector<16x128xf32>
    %13 = tpu.matmul %11, %12, %cst_9 {dimension_numbers = #tpu.dot_dimension_numbers<[1], [0], [0], [1], [0, 0, 1, 1], [], []>} : vector<16x512xbf16>, vector<512x128xbf16>, vector<16x128xf32> -> vector<16x128xf32>
    %c0_10 = arith.constant 0 : index
    %c0_11 = arith.constant 0 : index
    %14 = vector.load %arg5[%c0_10, %c0_11] : memref<1x128xf32, #tpu.memory_space<vmem>>, vector<1x128xf32>
    %15 = vector.broadcast %14 : vector<1x128xf32> to vector<16x128xf32>
    %16 = arith.addf %13, %15 : vector<16x128xf32>
    %cst_12 = arith.constant 0.000000e+00 : f32
    %17 = vector.broadcast %cst_12 : f32 to vector<16x128xf32>
    %18 = arith.cmpf ogt, %16, %17 : vector<16x128xf32>
    %cst_13 = arith.constant 2.000000e-01 : f32
    %19 = vector.broadcast %cst_13 : f32 to vector<16x128xf32>
    %20 = arith.mulf %19, %16 : vector<16x128xf32>
    %21 = arith.select %18, %16, %20 : vector<16x128xi1>, vector<16x128xf32>
    %c0_14 = arith.constant 0 : index
    %c0_15 = arith.constant 0 : index
    %22 = vector.load %arg6[%c0_14, %c0_15] : memref<1x128xf32, #tpu.memory_space<vmem>>, vector<1x128xf32>
    %23 = vector.broadcast %22 : vector<1x128xf32> to vector<16x128xf32>
    %24 = arith.mulf %21, %23 : vector<16x128xf32>
    %cst_16 = arith.constant dense<0.000000e+00> : vector<16xf32>
    %25 = vector.multi_reduction <add>, %24, %cst_16 [1] : vector<16x128xf32> to vector<16xf32>
    %26 = vector.shape_cast %25 : vector<16xf32> to vector<16x1xf32>
    %c0_17 = arith.constant 0 : index
    %c0_18 = arith.constant 0 : index
    %27 = vector.load %arg7[%c0_17, %c0_18] : memref<1x1xf32, #tpu.memory_space<vmem>>, vector<1x1xf32>
    %28 = vector.broadcast %27 : vector<1x1xf32> to vector<16x1xf32>
    %29 = arith.addf %26, %28 : vector<16x1xf32>
    %30 = arith.negf %29 : vector<16x1xf32>
    %31 = math.exp %30 : vector<16x1xf32>
    %cst_19 = arith.constant 1.000000e+00 : f32
    %32 = vector.broadcast %cst_19 : f32 to vector<16x1xf32>
    %33 = arith.addf %32, %31 : vector<16x1xf32>
    %34 = arith.divf %32, %33 : vector<16x1xf32>
    %c0_20 = arith.constant 0 : index
    %c0_21 = arith.constant 0 : index
    %35 = vector.load %arg8[%c0_20, %c0_21] : memref<16x1xf32, #tpu.memory_space<vmem>>, vector<16x1xf32>
    tpu.vector_store %arg8[%c0_20, %c0_21], %34 {strides = array<i32>} : memref<16x1xf32, #tpu.memory_space<vmem>>, vector<16x1xf32>,
    return
  }
  func.func @transform_0(%arg0: i32) -> (i32, i32) {
    %c0_i32 = arith.constant 0 : i32
    %c0_i32_0 = arith.constant 0 : i32
    return %arg0, %c0_i32 : i32, i32
  }
  func.func @transform_1(%arg0: i32) -> (i32, i32) {
    %c0_i32 = arith.constant 0 : i32
    %c0_i32_0 = arith.constant 0 : i32
    %c0_i32_1 = arith.constant 0 : i32
    return %c0_i32, %c0_i32_0 : i32, i32
  }
  func.func @transform_2(%arg0: i32) -> (i32, i32) {
    %c0_i32 = arith.constant 0 : i32
    %c0_i32_0 = arith.constant 0 : i32
    %c0_i32_1 = arith.constant 0 : i32
    return %c0_i32, %c0_i32_0 : i32, i32
  }
  func.func @transform_3(%arg0: i32) -> (i32, i32) {
    %c0_i32 = arith.constant 0 : i32
    %c0_i32_0 = arith.constant 0 : i32
    %c0_i32_1 = arith.constant 0 : i32
    return %c0_i32, %c0_i32_0 : i32, i32
  }
  func.func @transform_4(%arg0: i32) -> (i32, i32) {
    %c0_i32 = arith.constant 0 : i32
    %c0_i32_0 = arith.constant 0 : i32
    %c0_i32_1 = arith.constant 0 : i32
    return %c0_i32, %c0_i32_0 : i32, i32
  }
  func.func @transform_5(%arg0: i32) -> (i32, i32) {
    %c0_i32 = arith.constant 0 : i32
    %c0_i32_0 = arith.constant 0 : i32
    %c0_i32_1 = arith.constant 0 : i32
    return %c0_i32, %c0_i32_0 : i32, i32
  }
  func.func @transform_6(%arg0: i32) -> (i32, i32) {
    %c0_i32 = arith.constant 0 : i32
    %c0_i32_0 = arith.constant 0 : i32
    %c0_i32_1 = arith.constant 0 : i32
    return %c0_i32, %c0_i32_0 : i32, i32
  }
  func.func @transform_7(%arg0: i32) -> (i32, i32) {
    %c0_i32 = arith.constant 0 : i32
    %c0_i32_0 = arith.constant 0 : i32
    return %arg0, %c0_i32 : i32, i32
  }
}

</mosaic_0001>

<bundles_post_ra>
// kernel: tpu_custom_call.1
= control target key start
LH: loop header
LB: loop body
LE: loop exit
PB: predicated region body
PF: predicated region fallthrough
CT: control target
= control target key end

     0   :  { %s1811_s0 = inlined_call_operand.hbm [shape: bf16[16,384], index: 0, kind: input, shape index: {}]   ;;  %s1812_s1 = inlined_call_operand.hbm [shape: bf16[384,512], index: 1, kind: input, shape index: {}]   ;;  %s1813_s2 = inlined_call_operand.vmem [shape: f32[1,512], index: 2, kind: input, shape index: {}]   ;;  %s1814_s3 = inlined_call_operand.hbm [shape: bf16[512,128], index: 3, kind: input, shape index: {}]   ;;  %s1815_s4 = inlined_call_operand.vmem [shape: f32[1,128], index: 4, kind: input, shape index: {}]   ;;  %s1816_s5 = inlined_call_operand.vmem [shape: f32[1,128], index: 5, kind: input, shape index: {}]   ;;  %s1817_s6 = inlined_call_operand.<no memory space> [shape: f32[1,1], index: 6, kind: input, shape index: {}]   ;;  %s1818_s7 = inlined_call_operand.vmem [shape: f32[16,1], index: 7, kind: output, shape index: {}]  }
   0x1   :  { %v12_v0 = vstv %s1817_s6 }
   0x2   :  { %13 = vst [vmem:[#allocation2] sm:$0x1] %v12_v0 }
   0x3   :  { %14 = vsyncpa [#allocation4], 0 }
   0x4   :  { %15 = vsyncpa [#allocation6], 0  ;;  %s1724_s26 = smov [#allocation5]  }
   0x5   :  { %s33_s27 = sshll.u32 %s1724_s26, 4  ;;  %s34_s27 = int_to_ptr.vmem [resolvable:$true] %s33_s27 }
   0x6   :  { %s1668_s28 = scalar_lea.vmem %s34_s27, 12288  ;;  %p1673_p1 = scmp.lt.s32.totalorder %s34_s27, %s34_s27 }
   0x7   :  { %p1669_p0 = scmp.ne.s32.totalorder %s34_s27, %s1668_s28  ;;  %p1674_p2 = scmp.lt.s32.totalorder %s1668_s28, %s1668_s28 }
   0x9   :  { %p1675_p3 = por %p1674_p2, %p1673_p1 }
   0xb   :  { %p1676_p4 = pnand %p1675_p3, %p1669_p0 }
   0xd   :  { %1679 = shalt.err (!%p1676_p4)
}
   0xe   :  { %s1725_s29 = smov 256   ;;  %s1726_s30 = smov 16  }
   0xf   :  { %39 = dma.hbm_to_vmem [thread:$0]  %s1812_s1, 12288, %s34_s27, [#allocation6], %s1725_s29, %s1725_s29, %s1726_s30  }
  0x10   :  { %s1727_s6 = smov [#allocation3]  }
  0x11   :  { %s21_s10 = sshll.u32 %s1727_s6, 4  ;;  %s22_s10 = int_to_ptr.vmem [resolvable:$true] %s21_s10 }
  0x12   :  { %s1688_s11 = scalar_lea.vmem %s22_s10, 384  ;;  %p1693_p6 = scmp.lt.s32.totalorder %s22_s10, %s22_s10 }
  0x13   :  { %p1689_p5 = scmp.ne.s32.totalorder %s22_s10, %s1688_s11  ;;  %p1694_p7 = scmp.lt.s32.totalorder %s1688_s11, %s1688_s11 }
  0x15   :  { %p1695_p8 = por %p1694_p7, %p1693_p6 }
  0x17   :  { %p1696_p9 = pnand %p1695_p8, %p1689_p5 }
  0x19   :  { %1699 = shalt.err (!%p1696_p9)
}
  0x1a   :  { %s1728_s12 = smov 192   ;;  %s1729_s13 = smov 12  }
  0x1b   :  { %27 = dma.hbm_to_vmem [thread:$0]  %s1811_s0, 384, %s22_s10, [#allocation4], %s1728_s12, %s1728_s12, %s1729_s13  }
  0x1c   :  { %s1730_s16 = smov [#allocation7]  }
  0x1d   :  { %s47_s17 = sshll.u32 %s1730_s16, 4  ;;  %s48_s17 = int_to_ptr.vmem [resolvable:$true] %s47_s17 }
  0x1e   :  { %s1708_s1 = scalar_lea.vmem %s48_s17, 4096  ;;  %p1713_p11 = scmp.lt.s32.totalorder %s48_s17, %s48_s17 }
  0x1f   :  { %p1709_p10 = scmp.ne.s32.totalorder %s48_s17, %s1708_s1  ;;  %p1714_p12 = scmp.lt.s32.totalorder %s1708_s1, %s1708_s1 }
  0x21   :  { %p1715_p13 = por %p1714_p12, %p1713_p11 }
  0x23   :  { %p1716_p0 = pnand %p1715_p13, %p1709_p10 }
  0x25   :  { %1719 = shalt.err (!%p1716_p0)
}
  0x26   :  { %s1731_s18 = smov 64   ;;  %s1732_s19 = smov 4  }
  0x27   :  { %53 = dma.hbm_to_vmem [thread:$0]  %s1814_s3, 4096, %s48_s17, [#allocation6], %s1731_s18, %s1731_s18, %s1732_s19  }
  0x28   :  { %1720 = dma.done.wait [#allocation4], 384  }
  0x29   :  { %1721 = vsyncadd [#allocation4], 4294966912 }
  0x2a   :  { %1722 = dma.done.wait [#allocation6], 16384  }
  0x2b   :  { %1723 = vsyncadd [#allocation6], 4294950912  ;;  %v1733_v1 = vmov 0   ;;  %v1472_v2 = vld [vmem:[#allocation5 + $0xe4] ss:$16 sps:$4 sm:$0xff]   ;;  %vm1273_vm10 = vcmask 7168  }
  0x2c   :  { %763 = vmatprep.mubr.bf16.mxu1 %v1733_v1  ;;  %v1474_v3 = vld [vmem:[#allocation5 + $0x2e4] ss:$16 sps:$4 sm:$0xff]   ;;  %688 = vmatprep.subr.bf16.mxu0 %v1472_v2  ;;  %v1476_v4 = vld [vmem:[#allocation5 + $0xe0] ss:$16 sps:$4 sm:$0xff]   ;;  %v1525_v35 = vld [vmem:[#allocation5 + $0xec] ss:$16 sps:$4 sm:$0xff]  }
  0x2d   :  { %v1477_v5 = vld [vmem:[#allocation5 + $0x2e0] ss:$16 sps:$4 sm:$0xff]   ;;  %731 = vmatprep.subr.bf16.mxu1 %v1474_v3  ;;  %v1478_v6 = vld [vmem:[#allocation5 + $0xc4] ss:$16 sps:$4 sm:$0xff]   ;;  %689 = vmatpush1.bf16.msra.mxu0 %v1476_v4  ;;  %v1523_v37 = vld [vmem:[#allocation5 + $0xe8] ss:$16 sps:$4 sm:$0xff]  }
  0x2e   :  { %732 = vmatpush1.bf16.msra.mxu1 %v1477_v5  ;;  %v1480_v7 = vld [vmem:[#allocation5 + $0x2c4] ss:$16 sps:$4 sm:$0xff]   ;;  %v1482_v8 = vld [vmem:[#allocation5 + $0xc0] ss:$16 sps:$4 sm:$0xff]   ;;  %690 = vmatprep.subr.bf16.mxu0 %v1478_v6  ;;  %v1531_v40 = vld [vmem:[#allocation5 + $0xcc] ss:$16 sps:$4 sm:$0xff]  }
  0x2f   :  { %v1483_v9 = vld [vmem:[#allocation5 + $0x2c0] ss:$16 sps:$4 sm:$0xff]   ;;  %733 = vmatprep.subr.bf16.mxu1 %v1480_v7  ;;  %v1484_v10 = vld [vmem:[#allocation5 + $0xa4] ss:$16 sps:$4 sm:$0xff]   ;;  %v1529_v41 = vld [vmem:[#allocation5 + $0xc8] ss:$16 sps:$4 sm:$0xff]  }
  0x30   :  { %v1486_v11 = vld [vmem:[#allocation5 + $0x2a4] ss:$16 sps:$4 sm:$0xff]   ;;  %v1488_v12 = vld [vmem:[#allocation5 + $0xa0] ss:$16 sps:$4 sm:$0xff]   ;;  %v1537_v44 = vld [vmem:[#allocation5 + $0xac] ss:$16 sps:$4 sm:$0xff]  }
  0x31   :  { %v1489_v13 = vld [vmem:[#allocation5 + $0x2a0] ss:$16 sps:$4 sm:$0xff]   ;;  %691 = vmatpush1.bf16.msra.mxu0 %v1482_v8  ;;  %v1490_v14 = vld [vmem:[#allocation5 + $0x84] ss:$16 sps:$4 sm:$0xff]   ;;  %v1535_v45 = vld [vmem:[#allocation5 + $0xa8] ss:$16 sps:$4 sm:$0xff]  }
  0x32   :  { %734 = vmatpush1.bf16.msra.mxu1 %v1483_v9  ;;  %692 = vmatprep.subr.bf16.mxu0 %v1484_v10  ;;  %v1492_v15 = vld [vmem:[#allocation5 + $0x284] ss:$16 sps:$4 sm:$0xff]   ;;  %v1494_v16 = vld [vmem:[#allocation5 + $0x80] ss:$16 sps:$4 sm:$0xff]   ;;  %v1543_v48 = vld [vmem:[#allocation5 + $0x8c] ss:$16 sps:$4 sm:$0xff]  }
  0x33   :  { %735 = vmatprep.subr.bf16.mxu1 %v1486_v11  ;;  %v1495_v17 = vld [vmem:[#allocation5 + $0x280] ss:$16 sps:$4 sm:$0xff]   ;;  %v1496_v18 = vld [vmem:[#allocation5 + $0x64] ss:$16 sps:$4 sm:$0xff]   ;;  %v1541_v49 = vld [vmem:[#allocation5 + $0x88] ss:$16 sps:$4 sm:$0xff]  }
  0x34   :  { %v1498_v19 = vld [vmem:[#allocation5 + $0x264] ss:$16 sps:$4 sm:$0xff]   ;;  %v1500_v20 = vld [vmem:[#allocation5 + $0x60] ss:$16 sps:$4 sm:$0xff]   ;;  %v1571_v52 = vld [vmem:[#allocation3 + $0x4] ss:$12 sps:$4 sm:$0xff]  }
  0x35   :  { %693 = vmatpush1.bf16.msra.mxu0 %v1488_v12  ;;  %v1501_v21 = vld [vmem:[#allocation5 + $0x260] ss:$16 sps:$4 sm:$0xff]   ;;  %v1502_v22 = vld [vmem:[#allocation5 + $0x44] ss:$16 sps:$4 sm:$0xff]   ;;  %v1549_v53 = vld [vmem:[#allocation5 + $0x6c] ss:$16 sps:$4 sm:$0xff]   ;;  %720 = vmatprep.mubr.bf16.mxu0 %v1571_v52 }
  0x36   :  { %736 = vmatpush1.bf16.msra.mxu1 %v1489_v13  ;;  %694 = vmatprep.subr.bf16.mxu0 %v1490_v14  ;;  %v1504_v23 = vld [vmem:[#allocation5 + $0x244] ss:$16 sps:$4 sm:$0xff]   ;;  %v1506_v24 = vld [vmem:[#allocation5 + $0x40] ss:$16 sps:$4 sm:$0xff]   ;;  %v1547_v54 = vld [vmem:[#allocation5 + $0x68] ss:$16 sps:$4 sm:$0xff]  }
  0x37   :  { %737 = vmatprep.subr.bf16.mxu1 %v1492_v15  ;;  %v1507_v25 = vld [vmem:[#allocation5 + $0x240] ss:$16 sps:$4 sm:$0xff]   ;;  %v1508_v26 = vld [vmem:[#allocation5 + $0x24] ss:$16 sps:$4 sm:$0xff]   ;;  %v1555_v57 = vld [vmem:[#allocation5 + $0x4c] ss:$16 sps:$4 sm:$0xff]  }
  0x38   :  { %v1510_v27 = vld [vmem:[#allocation5 + $0x224] ss:$16 sps:$4 sm:$0xff]   ;;  %v1512_v28 = vld [vmem:[#allocation5 + $0x20] ss:$16 sps:$4 sm:$0xff]   ;;  %v1553_v58 = vld [vmem:[#allocation5 + $0x48] ss:$16 sps:$4 sm:$0xff]  }
  0x39   :  { %695 = vmatpush1.bf16.msra.mxu0 %v1494_v16  ;;  %v1513_v29 = vld [vmem:[#allocation5 + $0x220] ss:$16 sps:$4 sm:$0xff]   ;;  %v1514_v30 = vld [vmem:[#allocation5 + $0x4] ss:$16 sps:$4 sm:$0xff]   ;;  %v1561_v61 = vld [vmem:[#allocation5 + $0x2c] ss:$16 sps:$4 sm:$0xff]  }
  0x3a   :  { %738 = vmatpush1.bf16.msra.mxu1 %v1495_v17  ;;  %696 = vmatprep.subr.bf16.mxu0 %v1496_v18  ;;  %v1516_v31 = vld [vmem:[#allocation5 + $0x204] ss:$16 sps:$4 sm:$0xff]   ;;  %v1518_v32 = vld [vmem:[#allocation5] ss:$16 sps:$4 sm:$0xff]   ;;  %v1559_v62 = vld [vmem:[#allocation5 + $0x28] ss:$16 sps:$4 sm:$0xff]  }
  0x3b   :  { %739 = vmatprep.subr.bf16.mxu1 %v1498_v19  ;;  %v1519_v33 = vld [vmem:[#allocation5 + $0x200] ss:$16 sps:$4 sm:$0xff]   ;;  %v1520_v34 = vld [vmem:[#allocation5 + $0x1e4] ss:$16 sps:$4 sm:$0xff]   ;;  %v1567_v2 = vld [vmem:[#allocation5 + $0xc] ss:$16 sps:$4 sm:$0xff]  }
  0x3c   :  { %v1787_v36 = vld [vmem:[#allocation3 + $0x8] ss:$12 sps:$4 sm:$0xff]   ;;  %v1527_v39 = vld [vmem:[#allocation5 + $0x1c4] ss:$16 sps:$4 sm:$0xff]   ;;  %v1565_v3 = vld [vmem:[#allocation5 + $0x8] ss:$16 sps:$4 sm:$0xff]  }
  0x3d   :  { %697 = vmatpush1.bf16.msra.mxu0 %v1500_v20  ;;  %v1526_v38 = vld [vmem:[#allocation5 + $0x1e0] ss:$16 sps:$4 sm:$0xff]   ;;  %v1533_v43 = vld [vmem:[#allocation5 + $0x1a4] ss:$16 sps:$4 sm:$0xff]   ;;  %v1574_v5 = vld [vmem:[#allocation5 + $0x1ec] ss:$16 sps:$4 sm:$0xff]  }
  0x3e   :  { %740 = vmatpush1.bf16.msra.mxu1 %v1501_v21  ;;  %698 = vmatprep.subr.bf16.mxu0 %v1502_v22  ;;  %v1532_v42 = vld [vmem:[#allocation5 + $0x1c0] ss:$16 sps:$4 sm:$0xff]   ;;  %v1539_v47 = vld [vmem:[#allocation5 + $0x184] ss:$16 sps:$4 sm:$0xff]   ;;  %v1577_v6 = vld [vmem:[#allocation5 + $0x2ec] ss:$16 sps:$4 sm:$0xff]  }
  0x3f   :  { %741 = vmatprep.subr.bf16.mxu1 %v1504_v23  ;;  %v1538_v46 = vld [vmem:[#allocation5 + $0x1a0] ss:$16 sps:$4 sm:$0xff]   ;;  %v1545_v51 = vld [vmem:[#allocation5 + $0x164] ss:$16 sps:$4 sm:$0xff]   ;;  %v1572_v8 = vld [vmem:[#allocation5 + $0x1e8] ss:$16 sps:$4 sm:$0xff]  }
  0x40   :  { %v1544_v50 = vld [vmem:[#allocation5 + $0x180] ss:$16 sps:$4 sm:$0xff]   ;;  %v1551_v56 = vld [vmem:[#allocation5 + $0x144] ss:$16 sps:$4 sm:$0xff]   ;;  %v1575_v9 = vld [vmem:[#allocation5 + $0x2e8] ss:$16 sps:$4 sm:$0xff]  }
  0x41   :  { %699 = vmatpush1.bf16.msra.mxu0 %v1506_v24  ;;  %v1550_v55 = vld [vmem:[#allocation5 + $0x160] ss:$16 sps:$4 sm:$0xff]   ;;  %v1557_v60 = vld [vmem:[#allocation5 + $0x124] ss:$16 sps:$4 sm:$0xff]   ;;  %v1580_v10 = vld [vmem:[#allocation5 + $0x1cc] ss:$16 sps:$4 sm:$0xff]  }
  0x42   :  { %742 = vmatpush1.bf16.msra.mxu1 %v1507_v25  ;;  %700 = vmatprep.subr.bf16.mxu0 %v1508_v26  ;;  %v1556_v59 = vld [vmem:[#allocation5 + $0x140] ss:$16 sps:$4 sm:$0xff]   ;;  %v1563_v0 = vld [vmem:[#allocation5 + $0x104] ss:$16 sps:$4 sm:$0xff]   ;;  %v1583_v11 = vld [vmem:[#allocation5 + $0x2cc] ss:$16 sps:$4 sm:$0xff]  }
  0x43   :  { %743 = vmatprep.subr.bf16.mxu1 %v1510_v27  ;;  %v1562_v63 = vld [vmem:[#allocation5 + $0x120] ss:$16 sps:$4 sm:$0xff]   ;;  %v1790_v7 = vld [vmem:[#allocation3] ss:$12 sps:$4 sm:$0xff]   ;;  %v1586_v14 = vld [vmem:[#allocation5 + $0x1ac] ss:$16 sps:$4 sm:$0xff]  }
  0x44   :  { %v1568_v4 = vld [vmem:[#allocation5 + $0x100] ss:$16 sps:$4 sm:$0xff]   ;;  %v1578_v12 = vld [vmem:[#allocation5 + $0x1c8] ss:$16 sps:$4 sm:$0xff]   ;;  %v1589_v15 = vld [vmem:[#allocation5 + $0x2ac] ss:$16 sps:$4 sm:$0xff]  }
  0x45   :  { %701 = vmatpush1.bf16.msra.mxu0 %v1512_v28  ;;  %v1581_v13 = vld [vmem:[#allocation5 + $0x2c8] ss:$16 sps:$4 sm:$0xff]   ;;  %v1592_v18 = vld [vmem:[#allocation5 + $0x18c] ss:$16 sps:$4 sm:$0xff]  }
  0x46   :  { %744 = vmatpush1.bf16.msra.mxu1 %v1513_v29  ;;  %702 = vmatprep.subr.bf16.mxu0 %v1514_v30  ;;  %v1584_v16 = vld [vmem:[#allocation5 + $0x1a8] ss:$16 sps:$4 sm:$0xff]   ;;  %v1595_v19 = vld [vmem:[#allocation5 + $0x28c] ss:$16 sps:$4 sm:$0xff]  }
  0x47   :  { %745 = vmatprep.subr.bf16.mxu1 %v1516_v31  ;;  %v1587_v17 = vld [vmem:[#allocation5 + $0x2a8] ss:$16 sps:$4 sm:$0xff]   ;;  %v1598_v22 = vld [vmem:[#allocation5 + $0x16c] ss:$16 sps:$4 sm:$0xff]  }
  0x48   :  { %v1590_v20 = vld [vmem:[#allocation5 + $0x188] ss:$16 sps:$4 sm:$0xff]   ;;  %v1601_v23 = vld [vmem:[#allocation5 + $0x26c] ss:$16 sps:$4 sm:$0xff]  }
  0x49   :  { %703 = vmatpush1.bf16.msra.mxu0 %v1518_v32  ;;  %v1593_v21 = vld [vmem:[#allocation5 + $0x288] ss:$16 sps:$4 sm:$0xff]   ;;  %v1604_v26 = vld [vmem:[#allocation5 + $0x14c] ss:$16 sps:$4 sm:$0xff]  }
  0x4a   :  { %746 = vmatpush1.bf16.msra.mxu1 %v1519_v33  ;;  %704 = vmatprep.subr.bf16.mxu0 %v1520_v34  ;;  %v1596_v24 = vld [vmem:[#allocation5 + $0x168] ss:$16 sps:$4 sm:$0xff]   ;;  %v1607_v27 = vld [vmem:[#allocation5 + $0x24c] ss:$16 sps:$4 sm:$0xff]  }
  0x4b   :  { %774 = vmatprep.subr.bf16.mxu1 %v1525_v35  ;;  %v1599_v25 = vld [vmem:[#allocation5 + $0x268] ss:$16 sps:$4 sm:$0xff]   ;;  %v1610_v29 = vld [vmem:[#allocation5 + $0x12c] ss:$16 sps:$4 sm:$0xff]  }
  0x4c   :  { %v1605_v28 = vld [vmem:[#allocation5 + $0x248] ss:$16 sps:$4 sm:$0xff]   ;;  %v1613_v30 = vld [vmem:[#allocation5 + $0x22c] ss:$16 sps:$4 sm:$0xff]  }
  0x4d   :  { %764 = vmatmul.mubr.bf16.vlgmr.msra.gmra.mxu1 %v1787_v36  ;;  %705 = vmatpush2.bf16.msra.mxu0 %v1526_v38  ;;  %v1608_v31 = vld [vmem:[#allocation5 + $0x128] ss:$16 sps:$4 sm:$0xff]   ;;  %v1616_v33 = vld [vmem:[#allocation5 + $0x10c] ss:$16 sps:$4 sm:$0xff]  }
  0x4e   :  { %775 = vmatpush1.bf16.msra.mxu1 %v1523_v37  ;;  %706 = vmatprep.subr.bf16.mxu0 %v1527_v39  ;;  %v1611_v32 = vld [vmem:[#allocation5 + $0x228] ss:$16 sps:$4 sm:$0xff]   ;;  %v1619_v34 = vld [vmem:[#allocation5 + $0x20c] ss:$16 sps:$4 sm:$0xff]  }
  0x4f   :  { %776 = vmatprep.subr.bf16.mxu1 %v1531_v40  ;;  %806 = vmatprep.mubr.bf16.mxu1 %v1571_v52  ;;  %v1614_v35 = vld [vmem:[#allocation5 + $0x108] ss:$16 sps:$4 sm:$0xff]   ;;  %v1622_v40 = vld [vmem:[#allocation7 + $0x70] sm:$0xff]   ;;  %v1635_v52 = vld [vmem:[#allocation7] sm:$0xff]  }
  0x50   :  { %v1617_v37 = vld [vmem:[#allocation5 + $0x208] ss:$16 sps:$4 sm:$0xff]  }
  0x51   :  { %707 = vmatpush2.bf16.msra.mxu0 %v1532_v42  ;;  %v1620_v38 = vld [vmem:[#allocation7 + $0x78] sm:$0xff]   ;;  %v1624_v42 = vld [vmem:[#allocation7 + $0x68] sm:$0xff]  }
  0x52   :  { %777 = vmatpush1.bf16.msra.mxu1 %v1529_v41  ;;  %708 = vmatprep.subr.bf16.mxu0 %v1533_v43  ;;  %v1621_v39 = vld [vmem:[#allocation7 + $0x38] sm:$0xff]   ;;  %v1623_v41 = vld [vmem:[#allocation7 + $0x30] sm:$0xff]   ;;  %v1625_v43 = vld [vmem:[#allocation7 + $0x28] sm:$0xff]  }
  0x53   :  { %778 = vmatprep.subr.bf16.mxu1 %v1537_v44  ;;  %v1626_v44 = vld [vmem:[#allocation7 + $0x60] sm:$0xff]  }
  0x55   :  { %709 = vmatpush2.bf16.msra.mxu0 %v1538_v46  ;;  %v1628_v46 = vld [vmem:[#allocation7 + $0x58] sm:$0xff]  }
  0x56   :  { %779 = vmatpush1.bf16.msra.mxu1 %v1535_v45  ;;  %710 = vmatprep.subr.bf16.mxu0 %v1539_v47  ;;  %v1627_v45 = vld [vmem:[#allocation7 + $0x20] sm:$0xff]   ;;  %v1629_v47 = vld [vmem:[#allocation7 + $0x18] sm:$0xff]  }
  0x57   :  { %780 = vmatprep.subr.bf16.mxu1 %v1543_v48  ;;  %v1631_v48 = vld [vmem:[#allocation7 + $0x10] sm:$0xff]  }
  0x59   :  { %711 = vmatpush2.bf16.msra.mxu0 %v1544_v50  ;;  %v1633_v50 = vld [vmem:[#allocation7 + $0x8] sm:$0xff]  }
  0x5a   :  { %781 = vmatpush1.bf16.msra.mxu1 %v1541_v49  ;;  %712 = vmatprep.subr.bf16.mxu0 %v1545_v51  ;;  %v1632_v49 = vld [vmem:[#allocation7 + $0x48] sm:$0xff]   ;;  %v1634_v51 = vld [vmem:[#allocation7 + $0x40] sm:$0xff]  }
  0x5b   :  { %782 = vmatprep.subr.bf16.mxu1 %v1549_v53  ;;  %v1636_v53 = vld [vmem:[#allocation7 + $0xf8] sm:$0xff]  }
  0x5d   :  { %713 = vmatpush2.bf16.msra.mxu0 %v1550_v55  ;;  %v1638_v55 = vld [vmem:[#allocation7 + $0xf0] sm:$0xff]  }
  0x5e   :  { %783 = vmatpush1.bf16.msra.mxu1 %v1547_v54  ;;  %714 = vmatprep.subr.bf16.mxu0 %v1551_v56  ;;  %v1637_v54 = vld [vmem:[#allocation7 + $0xb8] sm:$0xff]   ;;  %v1639_v56 = vld [vmem:[#allocation7 + $0xb0] sm:$0xff]  }
  0x5f   :  { %784 = vmatprep.subr.bf16.mxu1 %v1555_v57  ;;  %v1640_v57 = vld [vmem:[#allocation7 + $0xe8] sm:$0xff]  }
  0x61   :  { %715 = vmatpush2.bf16.msra.mxu0 %v1556_v59  ;;  %v1642_v59 = vld [vmem:[#allocation7 + $0xe0] sm:$0xff]  }
  0x62   :  { %785 = vmatpush1.bf16.msra.mxu1 %v1553_v58  ;;  %716 = vmatprep.subr.bf16.mxu0 %v1557_v60  ;;  %v1641_v58 = vld [vmem:[#allocation7 + $0xa8] sm:$0xff]   ;;  %v1643_v60 = vld [vmem:[#allocation7 + $0xa0] sm:$0xff]  }
  0x63   :  { %786 = vmatprep.subr.bf16.mxu1 %v1561_v61  ;;  %v1644_v61 = vld [vmem:[#allocation7 + $0xd8] sm:$0xff]  }
  0x65   :  { %717 = vmatpush2.bf16.msra.mxu0 %v1562_v63  ;;  %v1646_v63 = vld [vmem:[#allocation7 + $0xd0] sm:$0xff]  }
  0x66   :  { %787 = vmatpush1.bf16.msra.mxu1 %v1559_v62  ;;  %718 = vmatprep.subr.bf16.mxu0 %v1563_v0  ;;  %v1645_v62 = vld [vmem:[#allocation7 + $0x98] sm:$0xff]   ;;  %v1647_v0 = vld [vmem:[#allocation7 + $0x90] sm:$0xff]  }
  0x67   :  { %788 = vmatprep.subr.bf16.mxu1 %v1567_v2  ;;  %v1648_v2 = vld [vmem:[#allocation7 + $0xc8] sm:$0xff]  }
  0x69   :  { %719 = vmatpush2.bf16.msra.mxu0 %v1568_v4  ;;  %v1650_v4 = vld [vmem:[#allocation7 + $0xc0] sm:$0xff]  }
  0x6a   :  { %789 = vmatpush1.bf16.msra.mxu1 %v1565_v3  ;;  %817 = vmatprep.subr.bf16.mxu0 %v1577_v6  ;;  %v1649_v3 = vld [vmem:[#allocation7 + $0x88] sm:$0xff]   ;;  %v172_v6 = vlaneseq }
  0x6b   :  { %790 = vmatprep.subr.bf16.mxu1 %v1574_v5  ;;  %v1651_v5 = vld [vmem:[#allocation7 + $0x80] sm:$0xff]  }
  0x6c   :  { %721 = vmatmul.mubr.bf16.vlgmr.msra.gmra.mxu0 %v1790_v7 }
  0x6d   :  { %818 = vmatpush1.bf16.msra.mxu0 %v1575_v9  ;;  %849 = vmatprep.mubr.bf16.mxu0 %v1733_v1  ;;  %v1602_v1 = vld [vmem:[#allocation5 + $0x148] ss:$16 sps:$4 sm:$0xff]  }
  0x6e   :  { %791 = vmatpush2.bf16.msra.mxu1 %v1572_v8  ;;  %819 = vmatprep.subr.bf16.mxu0 %v1583_v11 }
  0x6f   :  { %792 = vmatprep.subr.bf16.mxu1 %v1580_v10  ;;  %v170_v10 = vld [vmem:[%s1813_s2] sm:$0xf] }
  0x71   :  { %820 = vmatpush1.bf16.msra.mxu0 %v1581_v13 }
  0x72   :  { %793 = vmatpush2.bf16.msra.mxu1 %v1578_v12  ;;  %821 = vmatprep.subr.bf16.mxu0 %v1589_v15 }
  0x73   :  { %794 = vmatprep.subr.bf16.mxu1 %v1586_v14 }
  0x75   :  { %822 = vmatpush1.bf16.msra.mxu0 %v1587_v17 }
  0x76   :  { %795 = vmatpush2.bf16.msra.mxu1 %v1584_v16  ;;  %823 = vmatprep.subr.bf16.mxu0 %v1595_v19 }
  0x77   :  { %796 = vmatprep.subr.bf16.mxu1 %v1592_v18 }
  0x79   :  { %824 = vmatpush1.bf16.msra.mxu0 %v1593_v21 }
  0x7a   :  { %797 = vmatpush2.bf16.msra.mxu1 %v1590_v20  ;;  %825 = vmatprep.subr.bf16.mxu0 %v1601_v23 }
  0x7b   :  { %798 = vmatprep.subr.bf16.mxu1 %v1598_v22 }
  0x7d   :  { %826 = vmatpush1.bf16.msra.mxu0 %v1599_v25 }
  0x7e   :  { %799 = vmatpush2.bf16.msra.mxu1 %v1596_v24  ;;  %827 = vmatprep.subr.bf16.mxu0 %v1607_v27 }
  0x7f   :  { %800 = vmatprep.subr.bf16.mxu1 %v1604_v26 }
  0x81   :  { %828 = vmatpush1.bf16.msra.mxu0 %v1605_v28 }
  0x82   :  { %801 = vmatpush2.bf16.msra.mxu1 %v1602_v1  ;;  %829 = vmatprep.subr.bf16.mxu0 %v1613_v30 }
  0x83   :  { %802 = vmatprep.subr.bf16.mxu1 %v1610_v29 }
  0x85   :  { %830 = vmatpush1.bf16.msra.mxu0 %v1611_v32 }
  0x86   :  { %803 = vmatpush2.bf16.msra.mxu1 %v1608_v31  ;;  %831 = vmatprep.subr.bf16.mxu0 %v1619_v34 }
  0x87   :  { %804 = vmatprep.subr.bf16.mxu1 %v1616_v33 }
  0x89   :  { %832 = vmatpush1.bf16.msra.mxu0 %v1617_v37 }
  0x8a   :  { %805 = vmatpush2.bf16.msra.mxu1 %v1614_v35  ;;  %1418 = vmatprep.subr.bf16.mxu0 %v1620_v38 }
  0x8b   :  { %1440 = vmatprep.subr.bf16.mxu1 %v1636_v53 }
  0x8c   :  { %850 = vmatmul.mubr.bf16.vlgmr.msra.gmra.mxu0 %v1787_v36  ;;  %v1630_v36 = vld [vmem:[#allocation7 + $0x50] sm:$0xff]  }
  0x8d   :  { %807 = vmatmul.mubr.bf16.vlgmr.msra.gmra.mxu1 %v1790_v7  ;;  %1419 = vmatpush3.bf16.msra.mxu0 %v1621_v39  ;;  %v173_v7 = vshrl.u32 %v172_v6, 7 }
  0x8e   :  { %1420 = vmatprep.subr.bf16.mxu0 %v1622_v40  ;;  %1441 = vmatpush3.bf16.msra.mxu1 %v1637_v54 }
  0x8f   :  { %1442 = vmatprep.subr.bf16.mxu1 %v1638_v55  ;;  %v174_v8 = vsub.s32 0, %v173_v7  ;;  %v178_v9 = vsub.s32 1, %v173_v7  ;;  %v182_v39 = vsub.s32 2, %v173_v7  ;;  %v186_v40 = vsub.s32 3, %v173_v7 }
  0x91   :  { %1421 = vmatpush3.bf16.msra.mxu0 %v1623_v41  ;;  %v175_v12 = vrot.slane %v170_v10, %v174_v8  ;;  %v179_v13 = vrot.slane %v170_v10, %v178_v9  ;;  %v183_v41 = vrot.slane %v170_v10, %v182_v39  ;;  %v1381_v9 = vld [vmem:[%s1815_s4] ss:$0 sm:$0xff] }
  0x92   :  { %1422 = vmatprep.subr.bf16.mxu0 %v1624_v42  ;;  %1443 = vmatpush3.bf16.msra.mxu1 %v1639_v56  ;;  %v187_v42 = vrot.slane %v170_v10, %v186_v40 }
  0x93   :  { %1444 = vmatprep.subr.bf16.mxu1 %v1640_v57 }
  0x95   :  { %1423 = vmatpush3.bf16.msra.mxu0 %v1625_v43 }
  0x96   :  { %1424 = vmatprep.subr.bf16.mxu0 %v1626_v44  ;;  %1445 = vmatpush3.bf16.msra.mxu1 %v1641_v58 }
  0x97   :  { %1446 = vmatprep.subr.bf16.mxu1 %v1642_v59 }
  0x99   :  { %1425 = vmatpush3.bf16.msra.mxu0 %v1627_v45 }
  0x9a   :  { %1426 = vmatprep.subr.bf16.mxu0 %v1628_v46  ;;  %1447 = vmatpush3.bf16.msra.mxu1 %v1643_v60 }
  0x9b   :  { %1448 = vmatprep.subr.bf16.mxu1 %v1644_v61 }
  0x9d   :  { %1427 = vmatpush3.bf16.msra.mxu0 %v1629_v47 }
  0x9e   :  { %1428 = vmatprep.subr.bf16.mxu0 %v1630_v36  ;;  %1449 = vmatpush3.bf16.msra.mxu1 %v1645_v62 }
  0x9f   :  { %1450 = vmatprep.subr.bf16.mxu1 %v1646_v63 }
  0xa1   :  { %1429 = vmatpush3.bf16.msra.mxu0 %v1631_v48 }
  0xa2   :  { %1430 = vmatprep.subr.bf16.mxu0 %v1632_v49  ;;  %1451 = vmatpush3.bf16.msra.mxu1 %v1647_v0 }
  0xa3   :  { %1452 = vmatprep.subr.bf16.mxu1 %v1648_v2 }
  0xa5   :  { %1431 = vmatpush3.bf16.msra.mxu0 %v1633_v50 }
  0xa6   :  { %1432 = vmatprep.subr.bf16.mxu0 %v1634_v51  ;;  %1453 = vmatpush3.bf16.msra.mxu1 %v1649_v3 }
  0xa7   :  { %1454 = vmatprep.subr.bf16.mxu1 %v1650_v4 }
  0xa9   :  { %1433 = vmatpush3.bf16.msra.mxu0 %v1635_v52 }
  0xaa   :  { %1455 = vmatpush3.bf16.msra.mxu1 %v1651_v5 }
 0x10d   :  { %v765_v11 = vpop.f32.mrf.mxu1 }
 0x10f   :  { %v767_v15 = vpop.f32.mrf.mxu1 }
 0x111   :  { %v769_v20 = vpop.f32.mrf.mxu1 }
 0x113   :  { %v771_v27 = vpop.f32.mrf.mxu1 }
 0x12c   :  { %v722_v14 = vpop.f32.mrf.mxu0 }
 0x12d   :  { %v723_v17 = vadd.f32 %v722_v14, %v175_v12 }
 0x12e   :  { %v724_v16 = vpop.f32.mrf.mxu0 }
 0x12f   :  { %v725_v18 = vadd.f32 %v724_v16, %v179_v13  ;;  %v766_v24 = vadd.f32 %v765_v11, %v723_v17 }
 0x130   :  { %v726_v19 = vpop.f32.mrf.mxu0 }
 0x131   :  { %v727_v21 = vadd.f32 %v726_v19, %v175_v12  ;;  %v768_v22 = vadd.f32 %v767_v15, %v725_v18  ;;  %v868_v30 = vmul.f32 0.2, %v766_v24  ;;  %vm860_vm2 = vcmp.gt.f32.partialorder %v766_v24, 0.0 }
 0x132   :  { %v728_v23 = vpop.f32.mrf.mxu0 }
 0x133   :  { %v770_v25 = vadd.f32 %v769_v20, %v727_v21  ;;  %v729_v26 = vadd.f32 %v728_v23, %v179_v13  ;;  %v869_v28 = vmul.f32 0.2, %v768_v22  ;;  %vm861_vm1 = vcmp.gt.f32.partialorder %v768_v22, 0.0 }
 0x134   :  { %v876_v35 = vsel %vm860_vm2, %v766_v24, %v868_v30 }
 0x135   :  { %v872_v1 = vmul.f32 0.2, %v770_v25  ;;  %vm864_vm0 = vcmp.gt.f32.partialorder %v770_v25, 0.0  ;;  %v772_v29 = vadd.f32 %v771_v27, %v729_v26  ;;  %v877_v33 = vsel %vm861_vm1, %v768_v22, %v869_v28  ;;  %v1414_v22 = vld [vmem:[%s1816_s5] ss:$0 sm:$0xff] }
 0x136   :  { %v1415_v28 = vld [vmem:[#allocation2] ss:$0 sm:$0xff] }
 0x137   :  { %vm865_vm3 = vcmp.gt.f32.partialorder %v772_v29, 0.0  ;;  %v873_v31 = vmul.f32 0.2, %v772_v29  ;;  %v880_v32 = vsel %vm864_vm0, %v770_v25, %v872_v1 }
 0x138   :  { %v884_v38 = vpack.c.bf16 %v880_v32, %v876_v35 }
 0x139   :  { %v881_v34 = vsel %vm865_vm3, %v772_v29, %v873_v31 }
 0x13a   :  { %v885_v37 = vpack.c.bf16 %v881_v34, %v877_v33 }
 0x13c   :  { %1183 = vmatprep.mubr.bf16.mxu0 %v885_v37 }
 0x13d   :  { %1184 = vmatmul.mubr.bf16.vlgmr.msra.gmra.mxu0 %v884_v38 }
 0x14c   :  { %v851_v44 = vpop.f32.mrf.mxu0 }
 0x14d   :  { %v808_v43 = vpop.f32.mrf.mxu1 }
 0x14e   :  { %v853_v46 = vpop.f32.mrf.mxu0  ;;  %v809_v47 = vadd.f32 %v808_v43, %v183_v41 }
 0x14f   :  { %v810_v45 = vpop.f32.mrf.mxu1 }
 0x150   :  { %v811_v36 = vadd.f32 %v810_v45, %v187_v42  ;;  %v855_v50 = vpop.f32.mrf.mxu0  ;;  %v852_v53 = vadd.f32 %v851_v44, %v809_v47 }
 0x151   :  { %v812_v48 = vpop.f32.mrf.mxu1 }
 0x152   :  { %v813_v49 = vadd.f32 %v812_v48, %v183_v41  ;;  %v854_v51 = vadd.f32 %v853_v46, %v811_v36  ;;  %v857_v57 = vpop.f32.mrf.mxu0  ;;  %v870_v60 = vmul.f32 0.2, %v852_v53  ;;  %vm862_vm6 = vcmp.gt.f32.partialorder %v852_v53, 0.0 }
 0x153   :  { %v814_v52 = vpop.f32.mrf.mxu1 }
 0x154   :  { %v856_v54 = vadd.f32 %v855_v50, %v813_v49  ;;  %v815_v55 = vadd.f32 %v814_v52, %v187_v42  ;;  %v871_v58 = vmul.f32 0.2, %v854_v51  ;;  %vm863_vm5 = vcmp.gt.f32.partialorder %v854_v51, 0.0 }
 0x155   :  { %v878_v2 = vsel %vm862_vm6, %v852_v53, %v870_v60 }
 0x156   :  { %v874_v56 = vmul.f32 0.2, %v856_v54  ;;  %vm866_vm4 = vcmp.gt.f32.partialorder %v856_v54, 0.0  ;;  %v858_v59 = vadd.f32 %v857_v57, %v815_v55  ;;  %v879_v63 = vsel %vm863_vm5, %v854_v51, %v871_v58 }
 0x158   :  { %vm867_vm7 = vcmp.gt.f32.partialorder %v858_v59, 0.0  ;;  %v875_v61 = vmul.f32 0.2, %v858_v59  ;;  %v882_v62 = vsel %vm866_vm4, %v856_v54, %v874_v56 }
 0x159   :  { %v886_v4 = vpack.c.bf16 %v882_v62, %v878_v2 }
 0x15a   :  { %v883_v0 = vsel %vm867_vm7, %v858_v59, %v875_v61 }
 0x15b   :  { %v887_v3 = vpack.c.bf16 %v883_v0, %v879_v63 }
 0x15d   :  { %1224 = vmatprep.mubr.bf16.mxu1 %v887_v3 }
 0x15e   :  { %1225 = vmatmul.mubr.bf16.vlgmr.msra.gmra.mxu1 %v886_v4 }
 0x1fd   :  { %v1434_v5 = vpop.f32.mrf.mxu0 }
 0x1ff   :  { %v1435_v6 = vpop.f32.mrf.mxu0 }
 0x200   :  { %v1436_v8 = vadd.f32 %v1435_v6, %v1434_v5 }
 0x201   :  { %v1437_v7 = vpop.f32.mrf.mxu0 }
 0x202   :  { %v1186_v13 = vadd.f32 %v1436_v8, %v1381_v9 }
 0x203   :  { %v1438_v10 = vpop.f32.mrf.mxu0 }
 0x204   :  { %v1439_v14 = vadd.f32 %v1438_v10, %v1437_v7 }
 0x206   :  { %v1189_v19 = vadd.f32 %v1439_v14, %v1381_v9 }
 0x21e   :  { %v1456_v11 = vpop.f32.mrf.mxu1 }
 0x220   :  { %v1457_v12 = vpop.f32.mrf.mxu1 }
 0x221   :  { %v1458_v15 = vadd.f32 %v1457_v12, %v1456_v11 }
 0x222   :  { %v1459_v16 = vpop.f32.mrf.mxu1 }
 0x223   :  { %v1227_v17 = vadd.f32 %v1458_v15, %v1186_v13 }
 0x224   :  { %v1460_v18 = vpop.f32.mrf.mxu1 }
 0x225   :  { %v1461_v20 = vadd.f32 %v1460_v18, %v1459_v16  ;;  %vm1233_vm8 = vcmp.gt.f32.partialorder %v1227_v17, 0.0  ;;  %v1235_v21 = vmul.f32 0.2, %v1227_v17 }
 0x227   :  { %v1230_v23 = vadd.f32 %v1461_v20, %v1189_v19  ;;  %v1237_v24 = vsel %vm1233_vm8, %v1227_v17, %v1235_v21 }
 0x228   :  { %v1246_v25 = vmul.f32 %v1414_v22, %v1237_v24 }
 0x229   :  { %vm1234_vm9 = vcmp.gt.f32.partialorder %v1230_v23, 0.0  ;;  %v1236_v26 = vmul.f32 0.2, %v1230_v23 }
 0x22a   :  { %1248 = vadd.xlane.f32.xlu0 %v1246_v25 }
 0x22b   :  { %v1238_v27 = vsel %vm1234_vm9, %v1230_v23, %v1236_v26 }
 0x22c   :  { %v1247_v1 = vmul.f32 %v1414_v22, %v1238_v27 }
 0x22e   :  { %1250 = vadd.xlane.f32.xlu0 %v1247_v1 }
 0x2b3   :  { %v1249_v29 = vpop.xlane.xlu0 %1248 }
 0x2b4   :  { %v1259_v30 = vadd.f32 %v1415_v28, %v1249_v29 }
 0x2b6   :  { %v1416_v31 = vmul.f32 -1.442695, %v1259_v30 }
 0x2b7   :  { %v1251_v32 = vpop.xlane.xlu0 %1250 }
 0x2b8   :  { %1652 = vpow2.f32 %v1416_v31  ;;  %v1260_v33 = vadd.f32 %v1415_v28, %v1251_v32 }
 0x2ba   :  { %v1417_v34 = vmul.f32 -1.442695, %v1260_v33 }
 0x2bc   :  { %1654 = vpow2.f32 %v1417_v34 }
 0x2c5   :  { %v1653_v35 = vpop.eup %1652 }
 0x2c6   :  { %v1267_v37 = vadd.f32 1.0, %v1653_v35 }
 0x2c8   :  { %1656 = vrcp.f32 %v1267_v37 }
 0x2c9   :  { %v1655_v38 = vpop.eup %1654 }
 0x2ca   :  { %v1268_v39 = vadd.f32 1.0, %v1655_v38 }
 0x2cc   :  { %1658 = vrcp.f32 %v1268_v39 }
 0x2d5   :  { %v1657_v40 = vpop.eup %1656 }
 0x2d6   :  { %1274 = vst.msk [vmem:[%s1818_s7] sm:$0xff] %vm1273_vm10, %v1657_v40 }
 0x2d9   :  { %v1659_v41 = vpop.eup %1658 }
 0x2da   :  { %1275 = vst.msk [vmem:[%s1818_s7 + $0x8] sm:$0xff] %vm1273_vm10, %v1659_v41 }
 0x2db   :  { %1280 = vsyncpa [#allocation4], 1 }
 0x2dc   :  { %1281 = vsyncpa [#allocation6], 1 }

</bundles_post_ra>
